<compile_context>
chip_gen: v5e
topology: v5e:2x2
jax: 0.10.0
libtpu: 0.0.40
codegen_flags: <defaults>
</compile_context>

<pallas_src>
import functools

import jax
import jax.numpy as jnp
from jax.experimental import pallas as pl
from jax.experimental.pallas import tpu as pltpu


def _round_up(x, m):
    return ((x + m - 1) // m) * m


def _vmem_capacity_bytes():
    """Best-effort physical VMEM capacity (falls back to the v7x-safe 64 MiB)."""
    try:
        info = pltpu.get_tpu_info()
        cap = int(getattr(info, "vmem_capacity_bytes", 0) or 0)
        if cap > 0:
            return cap
    except Exception:
        pass
    return 64 * 1024 * 1024


def _focal_loss_kernel(logits_ref, targets_ref, alpha_ref, out_ref, *,
                       gamma, n_valid, tile_rows, mask_rows):
    i = pl.program_id(0)

    logits = logits_ref[...].astype(jnp.float32)      # (tn, C)
    targets = targets_ref[...]                        # (tn, 1) int32
    alpha_t = alpha_ref[...]                          # (tn, 1) f32

    tn, c = logits.shape

    # boolean target mask via a lane-index iota compare (no gather, no f32 one-hot)
    class_ids = jax.lax.broadcasted_iota(jnp.int32, (1, c), 1)
    tmask = class_ids == targets                      # (tn, c) bool via broadcast

    # numerically stable cross-entropy: ce = logsumexp(logits) - logits[target]
    m = jnp.max(logits, axis=-1, keepdims=True)       # (tn, 1)
    shifted = logits - m                              # (tn, c)
    sumexp = jnp.sum(jnp.exp(shifted), axis=-1, keepdims=True)
    target_shift = jnp.sum(jnp.where(tmask, shifted, 0.0), axis=-1, keepdims=True)
    ce = jnp.log(sumexp) - target_shift               # (tn, 1)

    # pt = softmax[target] = exp(-ce): one (tn, 1) EUP exp instead of a
    # lane-wide multiply plus a second cross-lane reduction.
    pt = jnp.exp(-ce)

    # (1 - pt)**gamma: integer gamma -> repeated VPU multiplies (no EUP pow,
    # no NaN from a marginally negative base); else clamped float pow.
    one_minus_pt = 1.0 - pt
    if float(gamma).is_integer() and 0.0 <= float(gamma) <= 16.0:
        mod = jnp.ones_like(one_minus_pt)
        for _ in range(int(gamma)):
            mod = mod * one_minus_pt
    else:
        mod = jnp.power(jnp.maximum(one_minus_pt, 0.0), jnp.float32(gamma))

    focal = alpha_t * mod * ce                        # (tn, 1)

    if mask_rows:  # ragged final tile: rows past N contribute exactly 0
        row_ids = i * tile_rows + jax.lax.broadcasted_iota(jnp.int32, (tn, 1), 0)
        focal = jnp.where(row_ids < n_valid, focal, 0.0)

    # per-tile partial sum, lane-dense write to this tile's own output block
    out_ref[...] = jnp.broadcast_to(jnp.sum(focal), out_ref.shape)


def focal_loss(logits, targets, alpha=None, gamma=2.0, tile_rows=None):
    """Pallas equivalent of FocalLoss(alpha, gamma, reduction='mean')(logits, targets).

    logits:  (N, C) float32/bfloat16
    targets: (N,)   integer class indices
    alpha:   optional (C,) per-class weights
    """
    n, c = logits.shape
    itemsize = jnp.dtype(logits.dtype).itemsize

    targets_i = jnp.asarray(targets, dtype=jnp.int32)
    targets_col = targets_i.reshape(n, 1)
    if alpha is None:
        alpha_t = jnp.ones((n, 1), dtype=jnp.float32)
    else:
        alpha_arr = jnp.asarray(alpha, dtype=jnp.float32)
        alpha_t = jnp.take(alpha_arr, targets_i, axis=0).reshape(n, 1)

    # ---- generation-aware row tiling -------------------------------------
    # Per-row VMEM cost: double-buffered logits block (lanes padded to 128 in
    # VMEM layout), double-buffered (tn, 1) targets/alpha sidecars (one lane
    # tile each), and ~5 (tn, C) f32 in-kernel temporaries.
    c_lane = _round_up(c, 128)
    per_row_vmem = (2 * c_lane * itemsize      # logits, double-buffered
                    + 2 * 2 * 128 * 4          # targets + alpha_t, double-buffered
                    + 5 * c_lane * 4)          # f32 compute temporaries
    vmem_cap = _vmem_capacity_bytes()
    if tile_rows is None:
        # ~64 MiB working-set budget on v5e/v6e (128 MiB VMEM), ~32 MiB on v7x (64 MiB)
        vmem_budget = min(vmem_cap // 2, 64 * 1024 * 1024)
        tile_rows = vmem_budget // per_row_vmem
    tile_rows = max(8, (int(tile_rows) // 8) * 8)
    tile_rows = min(tile_rows, _round_up(n, 8))
    num_tiles = pl.cdiv(n, tile_rows)
    mask_rows = (n % tile_rows) != 0
    vmem_limit = min(int(vmem_cap * 0.85), 100 * 1024 * 1024)

    kernel = functools.partial(
        _focal_loss_kernel,
        gamma=float(gamma),
        n_valid=int(n),
        tile_rows=int(tile_rows),
        mask_rows=bool(mask_rows),
    )

    cost = pl.CostEstimate(
        flops=int(5 * n * c + 12 * n),
        transcendentals=int(n * c + 2 * n),
        bytes_accessed=int(n * c * itemsize + 8 * n + 512 * num_tiles),
    )

    # TODO(synk): for very large C add an online-logsumexp grid axis over C
    # (and pipeline_mode=pl.Buffered(3) on the then-skinny logits row tiles).
    partials = pl.pallas_call(
        kernel,
        out_shape=jax.ShapeDtypeStruct((num_tiles, 1, 128), jnp.float32),
        grid=(num_tiles,),
        in_specs=[
            pl.BlockSpec((tile_rows, c), lambda i: (i, 0)),   # logits row tile, full C
            pl.BlockSpec((tile_rows, 1), lambda i: (i, 0)),   # targets row tile
            pl.BlockSpec((tile_rows, 1), lambda i: (i, 0)),   # alpha[targets] row tile
        ],
        out_specs=pl.BlockSpec((1, 1, 128), lambda i: (i, 0, 0)),  # per-tile partials
        compiler_params=pltpu.CompilerParams(
            dimension_semantics=("parallel",),   # no carried state -> megacore-shardable
            vmem_limit_bytes=vmem_limit,
        ),
        cost_estimate=cost,
    )(logits, targets_col, alpha_t)

    # reduction='mean': sum per-tile partials, divide by N (== focal_loss.mean()).
    return jnp.sum(partials[:, 0, 0]) / jnp.float32(n)


def _reference_focal_loss(logits, targets, alpha, gamma):
    # plain-JAX reference mirroring the PyTorch module, for a sanity check
    logp = jax.nn.log_softmax(logits.astype(jnp.float32), axis=-1)
    ce = -jnp.take_along_axis(logp, targets[:, None], axis=-1)[:, 0]
    pt = jnp.exp(-ce)
    a = alpha[targets]
    return jnp.mean(a * (1.0 - pt) ** gamma * ce)


if __name__ == "__main__":
    key = jax.random.PRNGKey(0)
    k1, k2, k3, k4, k5 = jax.random.split(key, 5)

    # small classifier-style shapes: batch of logits over 16 classes
    N, C = 8, 16
    logits = jax.random.normal(k1, (N, C), dtype=jnp.float32)
    targets = jax.random.randint(k2, (N,), 0, C, dtype=jnp.int32)
    alpha = jax.random.uniform(k3, (C,), dtype=jnp.float32, minval=0.25, maxval=1.0)

    loss = jax.block_until_ready(focal_loss(logits, targets, alpha=alpha, gamma=2.0))
    ref = _reference_focal_loss(logits, targets, alpha, 2.0)
    assert jnp.allclose(loss, ref, rtol=1e-5, atol=1e-6), (loss, ref)

    # alpha=None path (pure (1-pt)^gamma * ce)
    loss_na = jax.block_until_ready(focal_loss(logits, targets, alpha=None, gamma=2.0))
    ref_na = _reference_focal_loss(logits, targets, jnp.ones((C,), jnp.float32), 2.0)
    assert jnp.allclose(loss_na, ref_na, rtol=1e-5, atol=1e-6), (loss_na, ref_na)

    # multi-tile + ragged-final-tile path (exercises the parallel row grid,
    # per-tile partial outputs, the unpadded C=10 class block, and row masking)
    N2, C2 = 300, 10
    logits2 = jax.random.normal(k4, (N2, C2), dtype=jnp.float32)
    targets2 = jax.random.randint(k5, (N2,), 0, C2, dtype=jnp.int32)
    loss2 = jax.block_until_ready(
        focal_loss(logits2, targets2, alpha=None, gamma=2.0, tile_rows=128))
    ref2 = _reference_focal_loss(logits2, targets2, jnp.ones((C2,), jnp.float32), 2.0)
    assert jnp.allclose(loss2, ref2, rtol=1e-5, atol=1e-6), (loss2, ref2)

    print("KERNEL_OK")
</pallas_src>

<mosaic_0001>
module attributes {stable_mosaic.version = 11 : i64} {
  func.func @_focal_loss_kernel(%arg0: i32, %arg1: memref<8x16xf32, #tpu.memory_space<vmem>>, %arg2: memref<8x1xi32, #tpu.memory_space<vmem>>, %arg3: memref<8x1xf32, #tpu.memory_space<vmem>>, %arg4: memref<1x1x128xf32, #tpu.memory_space<vmem>>) attributes {dimension_semantics = [#tpu.dimension_semantics<parallel>], iteration_bounds = array<i64: 1>, scalar_prefetch = 0 : i64, scratch_operands = 0 : i64, tpu.core_type = #tpu.core_type<tc>, window_params = [{transform_indices = @transform_0, window_bounds = array<i64: 8, 16>}, {transform_indices = @transform_1, window_bounds = array<i64: 8, 1>}, {transform_indices = @transform_2, window_bounds = array<i64: 8, 1>}, {transform_indices = @transform_3, window_bounds = array<i64: 1, 1, 128>}]} {
    %c0 = arith.constant 0 : index
    %c0_0 = arith.constant 0 : index
    %0 = vector.load %arg1[%c0, %c0_0] : memref<8x16xf32, #tpu.memory_space<vmem>>, vector<8x16xf32>
    %c0_1 = arith.constant 0 : index
    %c0_2 = arith.constant 0 : index
    %1 = vector.load %arg2[%c0_1, %c0_2] : memref<8x1xi32, #tpu.memory_space<vmem>>, vector<8x1xi32>
    %c0_3 = arith.constant 0 : index
    %c0_4 = arith.constant 0 : index
    %2 = vector.load %arg3[%c0_3, %c0_4] : memref<8x1xf32, #tpu.memory_space<vmem>>, vector<8x1xf32>
    %3 = tpu.iota {dimensions = array<i32: 1>} : vector<1x16xi32>
    %4 = vector.broadcast %3 : vector<1x16xi32> to vector<8x16xi32>
    %5 = vector.broadcast %1 : vector<8x1xi32> to vector<8x16xi32>
    %6 = arith.cmpi eq, %4, %5 : vector<8x16xi32>
    %cst = arith.constant dense<0xFF800000> : vector<8xf32>
    %7 = vector.multi_reduction <maximumf>, %0, %cst [1] : vector<8x16xf32> to vector<8xf32>
    %8 = vector.shape_cast %7 : vector<8xf32> to vector<8x1xf32>
    %9 = vector.broadcast %8 : vector<8x1xf32> to vector<8x16xf32>
    %10 = arith.subf %0, %9 : vector<8x16xf32>
    %11 = math.exp %10 : vector<8x16xf32>
    %cst_5 = arith.constant dense<0.000000e+00> : vector<8xf32>
    %12 = vector.multi_reduction <add>, %11, %cst_5 [1] : vector<8x16xf32> to vector<8xf32>
    %13 = vector.shape_cast %12 : vector<8xf32> to vector<8x1xf32>
    %cst_6 = arith.constant 0.000000e+00 : f32
    %14 = vector.broadcast %cst_6 : f32 to vector<8x16xf32>
    %15 = arith.select %6, %10, %14 : vector<8x16xi1>, vector<8x16xf32>
    %cst_7 = arith.constant dense<0.000000e+00> : vector<8xf32>
    %16 = vector.multi_reduction <add>, %15, %cst_7 [1] : vector<8x16xf32> to vector<8xf32>
    %17 = vector.shape_cast %16 : vector<8xf32> to vector<8x1xf32>
    %18 = math.log %13 : vector<8x1xf32>
    %19 = arith.subf %18, %17 : vector<8x1xf32>
    %cst_8 = arith.constant 0.000000e+00 : f32
    %20 = vector.broadcast %cst_8 : f32 to vector<8x1xf32>
    %21 = arith.subf %20, %19 : vector<8x1xf32>
    %22 = math.exp %21 : vector<8x1xf32>
    %cst_9 = arith.constant 1.000000e+00 : f32
    %23 = vector.broadcast %cst_9 : f32 to vector<8x1xf32>
    %24 = arith.subf %23, %22 : vector<8x1xf32>
    %cst_10 = arith.constant 1.000000e+00 : f32
    %25 = vector.broadcast %cst_10 : f32 to vector<8x1xf32>
    %26 = arith.mulf %25, %24 : vector<8x1xf32>
    %27 = arith.mulf %26, %24 : vector<8x1xf32>
    %28 = arith.mulf %2, %27 : vector<8x1xf32>
    %29 = arith.mulf %28, %19 : vector<8x1xf32>
    %30 = vector.shape_cast %29 : vector<8x1xf32> to vector<1x8x1xf32>
    %cst_11 = arith.constant dense<0.000000e+00> : vector<1xf32>
    %31 = vector.multi_reduction <add>, %30, %cst_11 [1, 2] : vector<1x8x1xf32> to vector<1xf32>
    %32 = vector.shape_cast %31 : vector<1xf32> to vector<1x1x1xf32>
    %33 = vector.extract %32[0, 0, 0] : f32 from vector<1x1x1xf32>
    %34 = vector.broadcast %33 : f32 to vector<1x1x128xf32>
    %c0_12 = arith.constant 0 : index
    %c0_13 = arith.constant 0 : index
    %c0_14 = arith.constant 0 : index
    %35 = vector.load %arg4[%c0_12, %c0_13, %c0_14] : memref<1x1x128xf32, #tpu.memory_space<vmem>>, vector<1x1x128xf32>
    tpu.vector_store %arg4[%c0_12, %c0_13, %c0_14], %34 {strides = array<i32>} : memref<1x1x128xf32, #tpu.memory_space<vmem>>, vector<1x1x128xf32>,
    return
  }
  func.func @transform_0(%arg0: i32) -> (i32, i32) {
    %c0_i32 = arith.constant 0 : i32
    %c0_i32_0 = arith.constant 0 : i32
    return %arg0, %c0_i32 : i32, i32
  }
  func.func @transform_1(%arg0: i32) -> (i32, i32) {
    %c0_i32 = arith.constant 0 : i32
    %c0_i32_0 = arith.constant 0 : i32
    return %arg0, %c0_i32 : i32, i32
  }
  func.func @transform_2(%arg0: i32) -> (i32, i32) {
    %c0_i32 = arith.constant 0 : i32
    %c0_i32_0 = arith.constant 0 : i32
    return %arg0, %c0_i32 : i32, i32
  }
  func.func @transform_3(%arg0: i32) -> (i32, i32, i32) {
    %c0_i32 = arith.constant 0 : i32
    %c0_i32_0 = arith.constant 0 : i32
    %c0_i32_1 = arith.constant 0 : i32
    return %arg0, %c0_i32, %c0_i32_0 : i32, i32, i32
  }
}

</mosaic_0001>

<bundles_post_ra>
// kernel: tpu_custom_call.1
= control target key start
LH: loop header
LB: loop body
LE: loop exit
PB: predicated region body
PF: predicated region fallthrough
CT: control target
= control target key end

     0   :  { %vm24_vm0 = vcmask 130048   ;;  %s151_s0 = inlined_call_operand.vmem [shape: f32[8,16], index: 0, kind: input, shape index: {}]   ;;  %s152_s1 = inlined_call_operand.vmem [shape: s32[8,1], index: 1, kind: input, shape index: {}]   ;;  %s153_s2 = inlined_call_operand.vmem [shape: f32[8,1], index: 2, kind: input, shape index: {}]   ;;  %s154_s3 = inlined_call_operand.hbm [shape: f32[1,1,128], index: 3, kind: output, shape index: {}]  }
   0x1   :  { %v15_v0 = vld [vmem:[%s151_s0] sm:$0xff] }
   0x2   :  { %8 = vsyncpa [#allocation3], 0  ;;  %v25_v1 = vsel %vm24_vm0, %v15_v0, -inf  ;;  %v114_v2 = vmov 0   ;;  %v16_v3 = vld [vmem:[%s152_s1] sm:$0xff]  ;;  %v18_v9 = vlaneseq  ;;  %vm48_vm2 = vcmask 7168  }
   0x3   :  { %81 = vset.pattern.permute.xlu0 %v114_v2  ;;  %v17_v23 = vld [vmem:[%s153_s2] sm:$0xff]  ;;  %s115_s16 = smov [#allocation2]   ;;  %s68_s2 = sshll.u32 %s154_s3, 4  ;;  %s69_s2 = int_to_ptr.hbm [resolvable:$true] %s68_s2 }
   0x4   :  { %26 = vmax.xlane.f32.xlu0 %v25_v1  ;;  %v19_v10 = vand.u32 127, %v18_v9  ;;  %s66_s17 = sshll.u32 %s115_s16, 4  ;;  %s67_s17 = int_to_ptr.vmem [resolvable:$true] %s66_s17 }
  0x18   :  { %21 = vperm.xlu0 %81, %v16_v3  }
  0x77   :  { %v27_v4 = vpop.xlane.xlu0 %26 }
  0x78   :  { %v28_v5 = vsub.f32 %v15_v0, %v27_v4 }
  0x7a   :  { %v29_v6 = vmul.f32 1.442695, %v28_v5 }
  0x7c   :  { %82 = vpow2.f32 %v29_v6 }
  0x82   :  { %v83_v7 = vpop.eup %82 }
  0x83   :  { %v31_v8 = vsel %vm24_vm0, %v83_v7, 0.0 }
  0x84   :  { %32 = vadd.xlane.f32.xlu1 %v31_v8 }
  0x8a   :  { %v22_v11 = vpop.permute.xlu0 %21 }
  0x8b   :  { %vm23_vm1 = vcmp.eq.s32.totalorder %v19_v10, %v22_v11 }
  0x8c   :  { %v34_v12 = vsel %vm23_vm1, %v28_v5, 0.0 }
  0x8d   :  { %v35_v13 = vsel %vm24_vm0, %v34_v12, 0.0 }
  0x8e   :  { %36 = vadd.xlane.f32.xlu1 %v35_v13 }
  0xf7   :  { %v33_v14 = vpop.xlane.xlu1 %32 }
  0xf8   :  { %84 = vlog2.f32 %v33_v14 }
  0xfe   :  { %v85_v15 = vpop.eup %84 }
  0xff   :  { %v39_v16 = vmul.f32 0.6931472, %v85_v15 }
 0x101   :  { %v37_v17 = vpop.xlane.xlu1 %36 }
 0x102   :  { %v40_v18 = vsub.f32 %v39_v16, %v37_v17 }
 0x104   :  { %v41_v19 = vsub.f32 0.0, %v40_v18 }
 0x106   :  { %v42_v20 = vmul.f32 1.442695, %v41_v19 }
 0x108   :  { %86 = vpow2.f32 %v42_v20 }
 0x10e   :  { %v87_v21 = vpop.eup %86 }
 0x10f   :  { %v44_v22 = vsub.f32 1.0, %v87_v21 }
 0x111   :  { %v45_v24 = vmul.f32 %v44_v22, %v44_v22 }
 0x113   :  { %v46_v25 = vmul.f32 %v45_v24, %v17_v23 }
 0x115   :  { %v47_v26 = vmul.f32 %v46_v25, %v40_v18 }
 0x117   :  { %v49_v27 = vsel %vm48_vm2, %v47_v26, 0.0 }
 0x118   :  { %50 = vadd.xlane.f32.xlu2 %v49_v27 }
 0x18b   :  { %v51_v28 = vpop.xlane.xlu2 %50 }
 0x18c   :  { %v52_v29 = vrot.slane %v51_v28, 4 }
 0x18e   :  { %v53_v30 = vadd.f32 %v52_v29, %v51_v28 }
 0x190   :  { %v54_v31 = vrot.slane %v53_v30, 2 }
 0x192   :  { %v55_v32 = vadd.f32 %v54_v31, %v53_v30 }
 0x194   :  { %v56_v33 = vrot.slane %v55_v32, 1 }
 0x196   :  { %v57_v34 = vadd.f32 %v56_v33, %v55_v32 }
 0x198   :  { %77 = vpush %v57_v34 }
 0x1c9   :  { %s78_s20 = spop %77 }
 0x1ca   :  { %v59_v35 = vstv %s78_s20 }
 0x1cb   :  { %60 = vst [vmem:[#allocation2] sm:$0x1] %v59_v35 }
 0x1cc   :  { %71 = dma.vmem_to_hbm [thread:$0]  %s67_s17, 16, %s69_s2, [#allocation3]  }
 0x1cd   :  { %112 = dma.done.wait [#allocation3], 16  }
 0x1ce   :  { %113 = vsyncadd [#allocation3], 4294967280 }
 0x1cf   :  { %76 = vsyncpa [#allocation3], 1 }

</bundles_post_ra>
